<compile_context>
chip_gen: v7x
topology: tpu7x:2x2x1
jax: 0.10.0
libtpu: 0.0.40
codegen_flags: <defaults>
</compile_context>

<pallas_src>
import math
import functools

import jax
import jax.numpy as jnp
import numpy as np
from jax.experimental import pallas as pl
from jax.experimental.pallas import tpu as pltpu


def mha_kernel(q_ref, k_ref, v_ref,
               wq_t_ref, wk_t_ref, wv_t_ref,
               bq_ref, bk_ref, bv_ref,
               wo_t_ref, bo_ref,
               out_ref, wts_ref=None,
               *, num_heads, head_dim, need_weights):
    # q_ref: (NB, L, E), k_ref/v_ref: (NB, S, E)
    # w*_t_ref: (E, E) pre-transposed weights, b*_ref: (1, E)
    NB, L, E = q_ref.shape
    S = k_ref.shape[1]
    H, hd = num_heads, head_dim

    # Flatten batch into rows: one wide (NB*L, E) @ (E, E) matmul per projection.
    q2 = q_ref[...].reshape(NB * L, E)
    k2 = k_ref[...].reshape(NB * S, E)
    v2 = v_ref[...].reshape(NB * S, E)

    # In-projections (weights already transposed in the wrapper: x @ W.T == x @ Wt).
    qp = jnp.dot(q2, wq_t_ref[...], preferred_element_type=jnp.float32) + bq_ref[...]
    kp = jnp.dot(k2, wk_t_ref[...], preferred_element_type=jnp.float32) + bk_ref[...]
    vp = jnp.dot(v2, wv_t_ref[...], preferred_element_type=jnp.float32) + bv_ref[...]

    scale = 1.0 / math.sqrt(hd)
    qp = qp * scale

    qp3 = qp.reshape(NB, L, E)
    kp3 = kp.reshape(NB, S, E)
    vp3 = vp.reshape(NB, S, E)

    # Head-batched tensors: (H*NB, L, hd) / (H*NB, S, hd).  Static head slices are
    # stacked along a new leading axis (no lane-axis concatenation anywhere).
    qh = jnp.stack([qp3[:, :, h * hd:(h + 1) * hd] for h in range(H)], axis=0)
    kh = jnp.stack([kp3[:, :, h * hd:(h + 1) * hd] for h in range(H)], axis=0)
    vh = jnp.stack([vp3[:, :, h * hd:(h + 1) * hd] for h in range(H)], axis=0)
    qh = qh.reshape(H * NB, L, hd)
    kh = kh.reshape(H * NB, S, hd)
    vh = vh.reshape(H * NB, S, hd)

    # One batched attention over all (head, batch) pairs: softmax emitted once.
    s = jnp.einsum('bld,bsd->bls', qh, kh,
                   preferred_element_type=jnp.float32)            # (H*NB, L, S)
    s = s - jnp.max(s, axis=-1, keepdims=True)
    e = jnp.exp(s)
    p = e * pl.reciprocal(jnp.sum(e, axis=-1, keepdims=True), approx=False)

    oh = jnp.einsum('bls,bsd->bld', p, vh,
                    preferred_element_type=jnp.float32)           # (H*NB, L, hd)
    oh4 = oh.reshape(H, NB, L, hd)

    # Output projection accumulated per head: sum_h (o_h @ WoT[h*hd:(h+1)*hd, :]).
    # This replaces the lane-axis concat of head outputs; the Wo^T slabs are
    # 8-row-aligned sublane slices.
    wo_t = wo_t_ref[...]                                          # (E, E)
    o = jnp.broadcast_to(bo_ref[...], (NB * L, E)).astype(jnp.float32)
    for h in range(H):
        o = o + jnp.dot(oh4[h].reshape(NB * L, hd),
                        wo_t[h * hd:(h + 1) * hd, :],
                        preferred_element_type=jnp.float32)
    out_ref[...] = o.reshape(NB, L, E).astype(out_ref.dtype)

    if need_weights:
        # average_attn_weights=True: mean over heads as a constant multiply.
        w_avg = jnp.sum(p.reshape(H, NB, L, S), axis=0) * (1.0 / H)
        wts_ref[...] = w_avg.astype(wts_ref.dtype)


def mha_forward(query, key, value, in_proj_weight, in_proj_bias,
                out_proj_weight, out_proj_bias, num_heads,
                *, need_weights=True, batch_blocks=1):
    """query/key/value: (L, N, E) / (S, N, E) / (S, N, E), PyTorch batch_first=False.

    batch_blocks: number of grid steps the batch is split into (1 = whole batch in
    one step; 2 is useful on v7x to feed both TensorCores).
    """
    L, N, E = query.shape
    S = key.shape[0]
    head_dim = E // num_heads
    assert N % batch_blocks == 0, "batch must divide batch_blocks"
    NB = N // batch_blocks

    # Batch-major for the kernel.
    q = jnp.transpose(query, (1, 0, 2))   # (N, L, E)
    k = jnp.transpose(key, (1, 0, 2))     # (N, S, E)
    v = jnp.transpose(value, (1, 0, 2))   # (N, S, E)

    # One-time host-side weight transposes (kernel does plain x @ Wt).
    wq_t = in_proj_weight[:E].T
    wk_t = in_proj_weight[E:2 * E].T
    wv_t = in_proj_weight[2 * E:].T
    wo_t = out_proj_weight.T
    bq = in_proj_bias[:E].reshape(1, E)
    bk = in_proj_bias[E:2 * E].reshape(1, E)
    bv = in_proj_bias[2 * E:].reshape(1, E)
    bo = out_proj_bias.reshape(1, E)

    kernel = functools.partial(mha_kernel, num_heads=num_heads,
                               head_dim=head_dim, need_weights=need_weights)

    out_shapes = [jax.ShapeDtypeStruct((N, L, E), query.dtype)]
    out_specs = [pl.BlockSpec((NB, L, E), lambda g: (g, 0, 0))]
    if need_weights:
        out_shapes.append(jax.ShapeDtypeStruct((N, L, S), jnp.float32))
        out_specs.append(pl.BlockSpec((NB, L, S), lambda g: (g, 0, 0)))

    results = pl.pallas_call(
        kernel,
        out_shape=tuple(out_shapes),
        grid=(batch_blocks,),
        in_specs=[
            pl.BlockSpec((NB, L, E), lambda g: (g, 0, 0)),   # q
            pl.BlockSpec((NB, S, E), lambda g: (g, 0, 0)),   # k
            pl.BlockSpec((NB, S, E), lambda g: (g, 0, 0)),   # v
            pl.BlockSpec((E, E), lambda g: (0, 0)),          # Wq^T (resident)
            pl.BlockSpec((E, E), lambda g: (0, 0)),          # Wk^T
            pl.BlockSpec((E, E), lambda g: (0, 0)),          # Wv^T
            pl.BlockSpec((1, E), lambda g: (0, 0)),          # bq
            pl.BlockSpec((1, E), lambda g: (0, 0)),          # bk
            pl.BlockSpec((1, E), lambda g: (0, 0)),          # bv
            pl.BlockSpec((E, E), lambda g: (0, 0)),          # Wo^T
            pl.BlockSpec((1, E), lambda g: (0, 0)),          # bo
        ],
        out_specs=tuple(out_specs),
        compiler_params=pltpu.CompilerParams(dimension_semantics=("parallel",)),
    )(q, k, v, wq_t, wk_t, wv_t, bq, bk, bv, wo_t, bo)

    attn_output = jnp.transpose(results[0], (1, 0, 2))   # back to (L, N, E)
    if need_weights:
        return attn_output, results[1]                   # weights: (N, L, S)
    return attn_output, None


def mha_reference(query, key, value, in_proj_weight, in_proj_bias,
                  out_proj_weight, out_proj_bias, num_heads):
    """Pure-JAX reference mirroring F.multi_head_attention_forward semantics."""
    L, N, E = query.shape
    S = key.shape[0]
    hd = E // num_heads
    wq, wk, wv = in_proj_weight[:E], in_proj_weight[E:2 * E], in_proj_weight[2 * E:]
    bq, bk, bv = in_proj_bias[:E], in_proj_bias[E:2 * E], in_proj_bias[2 * E:]
    q = query @ wq.T + bq
    k = key @ wk.T + bk
    v = value @ wv.T + bv
    q = q.reshape(L, N, num_heads, hd).transpose(1, 2, 0, 3)
    k = k.reshape(S, N, num_heads, hd).transpose(1, 2, 0, 3)
    v = v.reshape(S, N, num_heads, hd).transpose(1, 2, 0, 3)
    scores = (q / math.sqrt(hd)) @ jnp.swapaxes(k, -1, -2)          # (N, H, L, S)
    p = jax.nn.softmax(scores, axis=-1)
    o = p @ v                                                        # (N, H, L, hd)
    o = o.transpose(2, 0, 1, 3).reshape(L, N, E)
    attn_output = o @ out_proj_weight.T + out_proj_bias
    attn_weights = p.mean(axis=1)                                    # (N, L, S)
    return attn_output, attn_weights


if __name__ == "__main__":
    # Module config: embed_dim=32, attn_heads=4, dropout=0.0, batch_first=False
    L, S, N, E, H = 8, 8, 2, 32, 4

    key = jax.random.PRNGKey(0)
    k1, k2, k3, k4, k5 = jax.random.split(key, 5)

    # Deterministic parameter init mirroring _reset_parameters()
    fan_in, fan_out = E, 3 * E
    a = math.sqrt(3.0) * math.sqrt(2.0 / float(fan_in + fan_out))
    in_proj_weight = jax.random.uniform(k1, (3 * E, E), jnp.float32, -a, a)
    in_proj_bias = jnp.zeros((3 * E,), jnp.float32)                 # constant_(., 0.)
    bound = 1.0 / math.sqrt(E)
    out_proj_weight = jax.random.uniform(k2, (E, E), jnp.float32, -bound, bound)
    out_proj_bias = jnp.zeros((E,), jnp.float32)

    # seq-major (L, N, E) inputs like the PyTorch module (batch_first=False)
    query = jax.random.normal(k3, (L, N, E), jnp.float32)
    key_in = jax.random.normal(k4, (S, N, E), jnp.float32)
    value = jax.random.normal(k5, (S, N, E), jnp.float32)

    ref_out, ref_w = mha_reference(query, key_in, value,
                                   in_proj_weight, in_proj_bias,
                                   out_proj_weight, out_proj_bias, H)

    # Whole batch in a single grid step, need_weights=True (default module call).
    attn_out, attn_w = mha_forward(query, key_in, value,
                                   in_proj_weight, in_proj_bias,
                                   out_proj_weight, out_proj_bias, H)
    attn_out = jax.block_until_ready(attn_out)
    attn_w = jax.block_until_ready(attn_w)

    np.testing.assert_allclose(np.asarray(attn_out), np.asarray(ref_out),
                               atol=1e-4, rtol=1e-4)
    np.testing.assert_allclose(np.asarray(attn_w), np.asarray(ref_w),
                               atol=1e-4, rtol=1e-4)
    assert attn_out.shape == (L, N, E)
    assert attn_w.shape == (N, L, S)

    print("KERNEL_OK")
</pallas_src>

<mosaic_0001>
module attributes {stable_mosaic.version = 11 : i64} {
  func.func @mha_kernel(%arg0: i32, %arg1: memref<2x8x32xf32, #tpu.memory_space<vmem>>, %arg2: memref<2x8x32xf32, #tpu.memory_space<vmem>>, %arg3: memref<2x8x32xf32, #tpu.memory_space<vmem>>, %arg4: memref<32x32xf32, #tpu.memory_space<vmem>>, %arg5: memref<32x32xf32, #tpu.memory_space<vmem>>, %arg6: memref<32x32xf32, #tpu.memory_space<vmem>>, %arg7: memref<1x32xf32, #tpu.memory_space<vmem>>, %arg8: memref<1x32xf32, #tpu.memory_space<vmem>>, %arg9: memref<1x32xf32, #tpu.memory_space<vmem>>, %arg10: memref<32x32xf32, #tpu.memory_space<vmem>>, %arg11: memref<1x32xf32, #tpu.memory_space<vmem>>, %arg12: memref<2x8x32xf32, #tpu.memory_space<vmem>>, %arg13: memref<2x8x8xf32, #tpu.memory_space<vmem>>) attributes {dimension_semantics = [#tpu.dimension_semantics<parallel>], iteration_bounds = array<i64: 1>, scalar_prefetch = 0 : i64, scratch_operands = 0 : i64, tpu.core_type = #tpu.core_type<tc>, window_params = [{transform_indices = @transform_0, window_bounds = array<i64: 2, 8, 32>}, {transform_indices = @transform_1, window_bounds = array<i64: 2, 8, 32>}, {transform_indices = @transform_2, window_bounds = array<i64: 2, 8, 32>}, {pipeline_mode = #tpu.pipeline_mode<synchronous>, transform_indices = @transform_3, window_bounds = array<i64: 32, 32>}, {pipeline_mode = #tpu.pipeline_mode<synchronous>, transform_indices = @transform_4, window_bounds = array<i64: 32, 32>}, {pipeline_mode = #tpu.pipeline_mode<synchronous>, transform_indices = @transform_5, window_bounds = array<i64: 32, 32>}, {pipeline_mode = #tpu.pipeline_mode<synchronous>, transform_indices = @transform_6, window_bounds = array<i64: 1, 32>}, {pipeline_mode = #tpu.pipeline_mode<synchronous>, transform_indices = @transform_7, window_bounds = array<i64: 1, 32>}, {pipeline_mode = #tpu.pipeline_mode<synchronous>, transform_indices = @transform_8, window_bounds = array<i64: 1, 32>}, {pipeline_mode = #tpu.pipeline_mode<synchronous>, transform_indices = @transform_9, window_bounds = array<i64: 32, 32>}, {pipeline_mode = #tpu.pipeline_mode<synchronous>, transform_indices = @transform_10, window_bounds = array<i64: 1, 32>}, {transform_indices = @transform_11, window_bounds = array<i64: 2, 8, 32>}, {transform_indices = @transform_12, window_bounds = array<i64: 2, 8, 8>}]} {
    %c0 = arith.constant 0 : index
    %c0_0 = arith.constant 0 : index
    %c0_1 = arith.constant 0 : index
    %0 = vector.load %arg1[%c0, %c0_0, %c0_1] : memref<2x8x32xf32, #tpu.memory_space<vmem>>, vector<2x8x32xf32>
    %1 = vector.shape_cast %0 : vector<2x8x32xf32> to vector<16x32xf32>
    %c0_2 = arith.constant 0 : index
    %c0_3 = arith.constant 0 : index
    %c0_4 = arith.constant 0 : index
    %2 = vector.load %arg2[%c0_2, %c0_3, %c0_4] : memref<2x8x32xf32, #tpu.memory_space<vmem>>, vector<2x8x32xf32>
    %3 = vector.shape_cast %2 : vector<2x8x32xf32> to vector<16x32xf32>
    %c0_5 = arith.constant 0 : index
    %c0_6 = arith.constant 0 : index
    %c0_7 = arith.constant 0 : index
    %4 = vector.load %arg3[%c0_5, %c0_6, %c0_7] : memref<2x8x32xf32, #tpu.memory_space<vmem>>, vector<2x8x32xf32>
    %5 = vector.shape_cast %4 : vector<2x8x32xf32> to vector<16x32xf32>
    %c0_8 = arith.constant 0 : index
    %c0_9 = arith.constant 0 : index
    %6 = vector.load %arg4[%c0_8, %c0_9] : memref<32x32xf32, #tpu.memory_space<vmem>>, vector<32x32xf32>
    %cst = arith.constant dense<0.000000e+00> : vector<16x32xf32>
    %7 = tpu.matmul %1, %6, %cst {dimension_numbers = #tpu.dot_dimension_numbers<[1], [0], [0], [1], [0, 0, 1, 1], [], []>} : vector<16x32xf32>, vector<32x32xf32>, vector<16x32xf32> -> vector<16x32xf32>
    %c0_10 = arith.constant 0 : index
    %c0_11 = arith.constant 0 : index
    %8 = vector.load %arg7[%c0_10, %c0_11] : memref<1x32xf32, #tpu.memory_space<vmem>>, vector<1x32xf32>
    %9 = vector.broadcast %8 : vector<1x32xf32> to vector<16x32xf32>
    %10 = arith.addf %7, %9 : vector<16x32xf32>
    %c0_12 = arith.constant 0 : index
    %c0_13 = arith.constant 0 : index
    %11 = vector.load %arg5[%c0_12, %c0_13] : memref<32x32xf32, #tpu.memory_space<vmem>>, vector<32x32xf32>
    %cst_14 = arith.constant dense<0.000000e+00> : vector<16x32xf32>
    %12 = tpu.matmul %3, %11, %cst_14 {dimension_numbers = #tpu.dot_dimension_numbers<[1], [0], [0], [1], [0, 0, 1, 1], [], []>} : vector<16x32xf32>, vector<32x32xf32>, vector<16x32xf32> -> vector<16x32xf32>
    %c0_15 = arith.constant 0 : index
    %c0_16 = arith.constant 0 : index
    %13 = vector.load %arg8[%c0_15, %c0_16] : memref<1x32xf32, #tpu.memory_space<vmem>>, vector<1x32xf32>
    %14 = vector.broadcast %13 : vector<1x32xf32> to vector<16x32xf32>
    %15 = arith.addf %12, %14 : vector<16x32xf32>
    %c0_17 = arith.constant 0 : index
    %c0_18 = arith.constant 0 : index
    %16 = vector.load %arg6[%c0_17, %c0_18] : memref<32x32xf32, #tpu.memory_space<vmem>>, vector<32x32xf32>
    %cst_19 = arith.constant dense<0.000000e+00> : vector<16x32xf32>
    %17 = tpu.matmul %5, %16, %cst_19 {dimension_numbers = #tpu.dot_dimension_numbers<[1], [0], [0], [1], [0, 0, 1, 1], [], []>} : vector<16x32xf32>, vector<32x32xf32>, vector<16x32xf32> -> vector<16x32xf32>
    %c0_20 = arith.constant 0 : index
    %c0_21 = arith.constant 0 : index
    %18 = vector.load %arg9[%c0_20, %c0_21] : memref<1x32xf32, #tpu.memory_space<vmem>>, vector<1x32xf32>
    %19 = vector.broadcast %18 : vector<1x32xf32> to vector<16x32xf32>
    %20 = arith.addf %17, %19 : vector<16x32xf32>
    %cst_22 = arith.constant 0.353553385 : f32
    %21 = vector.broadcast %cst_22 : f32 to vector<16x32xf32>
    %22 = arith.mulf %10, %21 : vector<16x32xf32>
    %23 = vector.shape_cast %22 : vector<16x32xf32> to vector<2x8x32xf32>
    %24 = vector.shape_cast %15 : vector<16x32xf32> to vector<2x8x32xf32>
    %25 = vector.shape_cast %20 : vector<16x32xf32> to vector<2x8x32xf32>
    %26 = vector.extract_strided_slice %23 {offsets = [0, 0, 0], sizes = [2, 8, 8], strides = [1, 1, 1]} : vector<2x8x32xf32> to vector<2x8x8xf32>
    %27 = vector.extract_strided_slice %23 {offsets = [0, 0, 8], sizes = [2, 8, 8], strides = [1, 1, 1]} : vector<2x8x32xf32> to vector<2x8x8xf32>
    %28 = vector.extract_strided_slice %23 {offsets = [0, 0, 16], sizes = [2, 8, 8], strides = [1, 1, 1]} : vector<2x8x32xf32> to vector<2x8x8xf32>
    %29 = vector.extract_strided_slice %23 {offsets = [0, 0, 24], sizes = [2, 8, 8], strides = [1, 1, 1]} : vector<2x8x32xf32> to vector<2x8x8xf32>
    %30 = vector.shape_cast %26 : vector<2x8x8xf32> to vector<1x2x8x8xf32>
    %31 = vector.shape_cast %27 : vector<2x8x8xf32> to vector<1x2x8x8xf32>
    %32 = vector.shape_cast %28 : vector<2x8x8xf32> to vector<1x2x8x8xf32>
    %33 = vector.shape_cast %29 : vector<2x8x8xf32> to vector<1x2x8x8xf32>
    %34 = tpu.concatenate %30, %31, %32, %33 in 0 : vector<1x2x8x8xf32>, vector<1x2x8x8xf32>, vector<1x2x8x8xf32>, vector<1x2x8x8xf32> -> vector<4x2x8x8xf32>
    %35 = vector.extract_strided_slice %24 {offsets = [0, 0, 0], sizes = [2, 8, 8], strides = [1, 1, 1]} : vector<2x8x32xf32> to vector<2x8x8xf32>
    %36 = vector.extract_strided_slice %24 {offsets = [0, 0, 8], sizes = [2, 8, 8], strides = [1, 1, 1]} : vector<2x8x32xf32> to vector<2x8x8xf32>
    %37 = vector.extract_strided_slice %24 {offsets = [0, 0, 16], sizes = [2, 8, 8], strides = [1, 1, 1]} : vector<2x8x32xf32> to vector<2x8x8xf32>
    %38 = vector.extract_strided_slice %24 {offsets = [0, 0, 24], sizes = [2, 8, 8], strides = [1, 1, 1]} : vector<2x8x32xf32> to vector<2x8x8xf32>
    %39 = vector.shape_cast %35 : vector<2x8x8xf32> to vector<1x2x8x8xf32>
    %40 = vector.shape_cast %36 : vector<2x8x8xf32> to vector<1x2x8x8xf32>
    %41 = vector.shape_cast %37 : vector<2x8x8xf32> to vector<1x2x8x8xf32>
    %42 = vector.shape_cast %38 : vector<2x8x8xf32> to vector<1x2x8x8xf32>
    %43 = tpu.concatenate %39, %40, %41, %42 in 0 : vector<1x2x8x8xf32>, vector<1x2x8x8xf32>, vector<1x2x8x8xf32>, vector<1x2x8x8xf32> -> vector<4x2x8x8xf32>
    %44 = vector.extract_strided_slice %25 {offsets = [0, 0, 0], sizes = [2, 8, 8], strides = [1, 1, 1]} : vector<2x8x32xf32> to vector<2x8x8xf32>
    %45 = vector.extract_strided_slice %25 {offsets = [0, 0, 8], sizes = [2, 8, 8], strides = [1, 1, 1]} : vector<2x8x32xf32> to vector<2x8x8xf32>
    %46 = vector.extract_strided_slice %25 {offsets = [0, 0, 16], sizes = [2, 8, 8], strides = [1, 1, 1]} : vector<2x8x32xf32> to vector<2x8x8xf32>
    %47 = vector.extract_strided_slice %25 {offsets = [0, 0, 24], sizes = [2, 8, 8], strides = [1, 1, 1]} : vector<2x8x32xf32> to vector<2x8x8xf32>
    %48 = vector.shape_cast %44 : vector<2x8x8xf32> to vector<1x2x8x8xf32>
    %49 = vector.shape_cast %45 : vector<2x8x8xf32> to vector<1x2x8x8xf32>
    %50 = vector.shape_cast %46 : vector<2x8x8xf32> to vector<1x2x8x8xf32>
    %51 = vector.shape_cast %47 : vector<2x8x8xf32> to vector<1x2x8x8xf32>
    %52 = tpu.concatenate %48, %49, %50, %51 in 0 : vector<1x2x8x8xf32>, vector<1x2x8x8xf32>, vector<1x2x8x8xf32>, vector<1x2x8x8xf32> -> vector<4x2x8x8xf32>
    %53 = vector.shape_cast %34 : vector<4x2x8x8xf32> to vector<8x8x8xf32>
    %54 = vector.shape_cast %43 : vector<4x2x8x8xf32> to vector<8x8x8xf32>
    %55 = vector.shape_cast %52 : vector<4x2x8x8xf32> to vector<8x8x8xf32>
    "tpu.trace_start"() <{level = 10 : i32, message = "bld,bsd->bls"}> : () -> ()
    %cst_23 = arith.constant dense<0.000000e+00> : vector<8x8x8xf32>
    %56 = tpu.matmul %53, %54, %cst_23 {dimension_numbers = #tpu.dot_dimension_numbers<[2], [2], [1], [1], [0, 0, 0, 1, 1, 1], [0], [0]>} : vector<8x8x8xf32>, vector<8x8x8xf32>, vector<8x8x8xf32> -> vector<8x8x8xf32>
    "tpu.trace_stop"() : () -> ()
    %cst_24 = arith.constant dense<0xFF800000> : vector<8x8xf32>
    %57 = vector.multi_reduction <maximumf>, %56, %cst_24 [2] : vector<8x8x8xf32> to vector<8x8xf32>
    %58 = vector.shape_cast %57 : vector<8x8xf32> to vector<8x8x1xf32>
    %59 = vector.broadcast %58 : vector<8x8x1xf32> to vector<8x8x8xf32>
    %60 = arith.subf %56, %59 : vector<8x8x8xf32>
    %61 = math.exp %60 : vector<8x8x8xf32>
    %cst_25 = arith.constant dense<0.000000e+00> : vector<8x8xf32>
    %62 = vector.multi_reduction <add>, %61, %cst_25 [2] : vector<8x8x8xf32> to vector<8x8xf32>
    %63 = vector.shape_cast %62 : vector<8x8xf32> to vector<8x8x1xf32>
    %64 = tpu.reciprocal %63 : vector<8x8x1xf32> -> vector<8x8x1xf32>
    %65 = vector.broadcast %64 : vector<8x8x1xf32> to vector<8x8x8xf32>
    %66 = arith.mulf %61, %65 : vector<8x8x8xf32>
    "tpu.trace_start"() <{level = 10 : i32, message = "bls,bsd->bld"}> : () -> ()
    %cst_26 = arith.constant dense<0.000000e+00> : vector<8x8x8xf32>
    %67 = tpu.matmul %66, %55, %cst_26 {dimension_numbers = #tpu.dot_dimension_numbers<[2], [1], [1], [2], [0, 0, 0, 1, 1, 2], [0], [0]>} : vector<8x8x8xf32>, vector<8x8x8xf32>, vector<8x8x8xf32> -> vector<8x8x8xf32>
    "tpu.trace_stop"() : () -> ()
    %68 = vector.shape_cast %67 : vector<8x8x8xf32> to vector<4x2x8x8xf32>
    %c0_27 = arith.constant 0 : index
    %c0_28 = arith.constant 0 : index
    %69 = vector.load %arg10[%c0_27, %c0_28] : memref<32x32xf32, #tpu.memory_space<vmem>>, vector<32x32xf32>
    %c0_29 = arith.constant 0 : index
    %c0_30 = arith.constant 0 : index
    %70 = vector.load %arg11[%c0_29, %c0_30] : memref<1x32xf32, #tpu.memory_space<vmem>>, vector<1x32xf32>
    %71 = vector.shape_cast %70 : vector<1x32xf32> to vector<1x32xf32>
    %72 = vector.broadcast %71 : vector<1x32xf32> to vector<16x32xf32>
    %73 = vector.extract_strided_slice %68 {offsets = [0, 0, 0, 0], sizes = [1, 2, 8, 8], strides = [1, 1, 1, 1]} : vector<4x2x8x8xf32> to vector<1x2x8x8xf32>
    %74 = vector.shape_cast %73 : vector<1x2x8x8xf32> to vector<2x8x8xf32>
    %75 = vector.shape_cast %74 : vector<2x8x8xf32> to vector<16x8xf32>
    %76 = vector.extract_strided_slice %69 {offsets = [0, 0], sizes = [8, 32], strides = [1, 1]} : vector<32x32xf32> to vector<8x32xf32>
    %cst_31 = arith.constant dense<0.000000e+00> : vector<16x32xf32>
    %77 = tpu.matmul %75, %76, %cst_31 {dimension_numbers = #tpu.dot_dimension_numbers<[1], [0], [0], [1], [0, 0, 1, 1], [], []>} : vector<16x8xf32>, vector<8x32xf32>, vector<16x32xf32> -> vector<16x32xf32>
    %78 = arith.addf %72, %77 : vector<16x32xf32>
    %79 = vector.extract_strided_slice %68 {offsets = [1, 0, 0, 0], sizes = [1, 2, 8, 8], strides = [1, 1, 1, 1]} : vector<4x2x8x8xf32> to vector<1x2x8x8xf32>
    %80 = vector.shape_cast %79 : vector<1x2x8x8xf32> to vector<2x8x8xf32>
    %81 = vector.shape_cast %80 : vector<2x8x8xf32> to vector<16x8xf32>
    %82 = vector.extract_strided_slice %69 {offsets = [8, 0], sizes = [8, 32], strides = [1, 1]} : vector<32x32xf32> to vector<8x32xf32>
    %cst_32 = arith.constant dense<0.000000e+00> : vector<16x32xf32>
    %83 = tpu.matmul %81, %82, %cst_32 {dimension_numbers = #tpu.dot_dimension_numbers<[1], [0], [0], [1], [0, 0, 1, 1], [], []>} : vector<16x8xf32>, vector<8x32xf32>, vector<16x32xf32> -> vector<16x32xf32>
    %84 = arith.addf %78, %83 : vector<16x32xf32>
    %85 = vector.extract_strided_slice %68 {offsets = [2, 0, 0, 0], sizes = [1, 2, 8, 8], strides = [1, 1, 1, 1]} : vector<4x2x8x8xf32> to vector<1x2x8x8xf32>
    %86 = vector.shape_cast %85 : vector<1x2x8x8xf32> to vector<2x8x8xf32>
    %87 = vector.shape_cast %86 : vector<2x8x8xf32> to vector<16x8xf32>
    %88 = vector.extract_strided_slice %69 {offsets = [16, 0], sizes = [8, 32], strides = [1, 1]} : vector<32x32xf32> to vector<8x32xf32>
    %cst_33 = arith.constant dense<0.000000e+00> : vector<16x32xf32>
    %89 = tpu.matmul %87, %88, %cst_33 {dimension_numbers = #tpu.dot_dimension_numbers<[1], [0], [0], [1], [0, 0, 1, 1], [], []>} : vector<16x8xf32>, vector<8x32xf32>, vector<16x32xf32> -> vector<16x32xf32>
    %90 = arith.addf %84, %89 : vector<16x32xf32>
    %91 = vector.extract_strided_slice %68 {offsets = [3, 0, 0, 0], sizes = [1, 2, 8, 8], strides = [1, 1, 1, 1]} : vector<4x2x8x8xf32> to vector<1x2x8x8xf32>
    %92 = vector.shape_cast %91 : vector<1x2x8x8xf32> to vector<2x8x8xf32>
    %93 = vector.shape_cast %92 : vector<2x8x8xf32> to vector<16x8xf32>
    %94 = vector.extract_strided_slice %69 {offsets = [24, 0], sizes = [8, 32], strides = [1, 1]} : vector<32x32xf32> to vector<8x32xf32>
    %cst_34 = arith.constant dense<0.000000e+00> : vector<16x32xf32>
    %95 = tpu.matmul %93, %94, %cst_34 {dimension_numbers = #tpu.dot_dimension_numbers<[1], [0], [0], [1], [0, 0, 1, 1], [], []>} : vector<16x8xf32>, vector<8x32xf32>, vector<16x32xf32> -> vector<16x32xf32>
    %96 = arith.addf %90, %95 : vector<16x32xf32>
    %97 = vector.shape_cast %96 : vector<16x32xf32> to vector<2x8x32xf32>
    %c0_35 = arith.constant 0 : index
    %c0_36 = arith.constant 0 : index
    %c0_37 = arith.constant 0 : index
    %98 = vector.load %arg12[%c0_35, %c0_36, %c0_37] : memref<2x8x32xf32, #tpu.memory_space<vmem>>, vector<2x8x32xf32>
    tpu.vector_store %arg12[%c0_35, %c0_36, %c0_37], %97 {strides = array<i32>} : memref<2x8x32xf32, #tpu.memory_space<vmem>>, vector<2x8x32xf32>,
    %99 = vector.shape_cast %66 : vector<8x8x8xf32> to vector<4x2x8x8xf32>
    %cst_38 = arith.constant dense<0.000000e+00> : vector<2x8x8xf32>
    %100 = vector.multi_reduction <add>, %99, %cst_38 [0] : vector<4x2x8x8xf32> to vector<2x8x8xf32>
    %cst_39 = arith.constant 2.500000e-01 : f32
    %101 = vector.broadcast %cst_39 : f32 to vector<2x8x8xf32>
    %102 = arith.mulf %100, %101 : vector<2x8x8xf32>
    %c0_40 = arith.constant 0 : index
    %c0_41 = arith.constant 0 : index
    %c0_42 = arith.constant 0 : index
    %103 = vector.load %arg13[%c0_40, %c0_41, %c0_42] : memref<2x8x8xf32, #tpu.memory_space<vmem>>, vector<2x8x8xf32>
    tpu.vector_store %arg13[%c0_40, %c0_41, %c0_42], %102 {strides = array<i32>} : memref<2x8x8xf32, #tpu.memory_space<vmem>>, vector<2x8x8xf32>,
    return
  }
  func.func @transform_0(%arg0: i32) -> (i32, i32, i32) {
    %c0_i32 = arith.constant 0 : i32
    %c0_i32_0 = arith.constant 0 : i32
    %c0_i32_1 = arith.constant 0 : i32
    return %arg0, %c0_i32, %c0_i32_0 : i32, i32, i32
  }
  func.func @transform_1(%arg0: i32) -> (i32, i32, i32) {
    %c0_i32 = arith.constant 0 : i32
    %c0_i32_0 = arith.constant 0 : i32
    %c0_i32_1 = arith.constant 0 : i32
    return %arg0, %c0_i32, %c0_i32_0 : i32, i32, i32
  }
  func.func @transform_2(%arg0: i32) -> (i32, i32, i32) {
    %c0_i32 = arith.constant 0 : i32
    %c0_i32_0 = arith.constant 0 : i32
    %c0_i32_1 = arith.constant 0 : i32
    return %arg0, %c0_i32, %c0_i32_0 : i32, i32, i32
  }
  func.func @transform_3(%arg0: i32) -> (i32, i32) {
    %c0_i32 = arith.constant 0 : i32
    %c0_i32_0 = arith.constant 0 : i32
    %c0_i32_1 = arith.constant 0 : i32
    return %c0_i32, %c0_i32_0 : i32, i32
  }
  func.func @transform_4(%arg0: i32) -> (i32, i32) {
    %c0_i32 = arith.constant 0 : i32
    %c0_i32_0 = arith.constant 0 : i32
    %c0_i32_1 = arith.constant 0 : i32
    return %c0_i32, %c0_i32_0 : i32, i32
  }
  func.func @transform_5(%arg0: i32) -> (i32, i32) {
    %c0_i32 = arith.constant 0 : i32
    %c0_i32_0 = arith.constant 0 : i32
    %c0_i32_1 = arith.constant 0 : i32
    return %c0_i32, %c0_i32_0 : i32, i32
  }
  func.func @transform_6(%arg0: i32) -> (i32, i32) {
    %c0_i32 = arith.constant 0 : i32
    %c0_i32_0 = arith.constant 0 : i32
    %c0_i32_1 = arith.constant 0 : i32
    return %c0_i32, %c0_i32_0 : i32, i32
  }
  func.func @transform_7(%arg0: i32) -> (i32, i32) {
    %c0_i32 = arith.constant 0 : i32
    %c0_i32_0 = arith.constant 0 : i32
    %c0_i32_1 = arith.constant 0 : i32
    return %c0_i32, %c0_i32_0 : i32, i32
  }
  func.func @transform_8(%arg0: i32) -> (i32, i32) {
    %c0_i32 = arith.constant 0 : i32
    %c0_i32_0 = arith.constant 0 : i32
    %c0_i32_1 = arith.constant 0 : i32
    return %c0_i32, %c0_i32_0 : i32, i32
  }
  func.func @transform_9(%arg0: i32) -> (i32, i32) {
    %c0_i32 = arith.constant 0 : i32
    %c0_i32_0 = arith.constant 0 : i32
    %c0_i32_1 = arith.constant 0 : i32
    return %c0_i32, %c0_i32_0 : i32, i32
  }
  func.func @transform_10(%arg0: i32) -> (i32, i32) {
    %c0_i32 = arith.constant 0 : i32
    %c0_i32_0 = arith.constant 0 : i32
    %c0_i32_1 = arith.constant 0 : i32
    return %c0_i32, %c0_i32_0 : i32, i32
  }
  func.func @transform_11(%arg0: i32) -> (i32, i32, i32) {
    %c0_i32 = arith.constant 0 : i32
    %c0_i32_0 = arith.constant 0 : i32
    %c0_i32_1 = arith.constant 0 : i32
    return %arg0, %c0_i32, %c0_i32_0 : i32, i32, i32
  }
  func.func @transform_12(%arg0: i32) -> (i32, i32, i32) {
    %c0_i32 = arith.constant 0 : i32
    %c0_i32_0 = arith.constant 0 : i32
    %c0_i32_1 = arith.constant 0 : i32
    return %arg0, %c0_i32, %c0_i32_0 : i32, i32, i32
  }
}

</mosaic_0001>

<bundles_post_ra>
// kernel: tpu_custom_call.1
= control target key start
LH: loop header
LB: loop body
LE: loop exit
PB: predicated region body
PF: predicated region fallthrough
CT: control target
= control target key end

     0   :  { %18 = vsyncpa [#allocation3], 0  ;;  %s3086_s0 = inlined_call_operand.hbm [shape: f32[2,8,32], index: 0, kind: input, shape index: {}]   ;;  %s3087_s1 = inlined_call_operand.hbm [shape: f32[2,8,32], index: 1, kind: input, shape index: {}]   ;;  %s3088_s2 = inlined_call_operand.hbm [shape: f32[2,8,32], index: 2, kind: input, shape index: {}]   ;;  %s3089_s3 = inlined_call_operand.hbm [shape: f32[32,32], index: 3, kind: input, shape index: {}]   ;;  %s3090_s4 = inlined_call_operand.hbm [shape: f32[32,32], index: 4, kind: input, shape index: {}]   ;;  %s3091_s5 = inlined_call_operand.hbm [shape: f32[32,32], index: 5, kind: input, shape index: {}]   ;;  %s3092_s6 = inlined_call_operand.vmem [shape: f32[1,32], index: 6, kind: input, shape index: {}]   ;;  %s3093_s7 = inlined_call_operand.vmem [shape: f32[1,32], index: 7, kind: input, shape index: {}]   ;;  %s3094_s8 = inlined_call_operand.hbm [shape: f32[1,32], index: 8, kind: input, shape index: {}]   ;;  %s3095_s9 = inlined_call_operand.vmem [shape: f32[32,32], index: 9, kind: input, shape index: {}]   ;;  %s3096_s10 = inlined_call_operand.vmem [shape: f32[1,32], index: 10, kind: input, shape index: {}]   ;;  %s3097_s11 = inlined_call_operand.hbm [shape: f32[2,8,32], index: 11, kind: output, shape index: {0}]   ;;  %s3098_s12 = inlined_call_operand.hbm [shape: f32[2,8,8], index: 12, kind: output, shape index: {1}]  }
   0x1   :  { %19 = vsyncpa [#allocation6], 0 }
   0x2   :  { %20 = vsyncpa [#allocation9], 0 }
   0x3   :  { %21 = vsyncpa [#allocation12], 0 }
   0x4   :  { %22 = vsyncpa [#allocation4], 0 }
   0x5   :  { %23 = vsyncpa [#allocation16], 0  ;;  %s2659_s21 = smov [#allocation5]   ;;  %s2660_s23 = smov [#allocation8]  }
   0x6   :  { %s41_s22 = sshll.u32 %s2659_s21, 4  ;;  %s65_s24 = sshll.u32 %s2660_s23, 4  ;;  %s42_s22 = int_to_ptr.vmem [resolvable:$true] %s41_s22  ;;  %s2740_s24 = int_to_ptr.vmem [resolvable:$true] %s65_s24 }
   0x7   :  { %s2449_s27 = scalar_lea.hbm %s3087_s1, 256 }
   0x8   :  { %p2450_p0 = scmp.ne.s32.totalorder %s3087_s1, %s2449_s27  ;;  %p2453_p1 = scmp.lt.u32.totalorder %s2449_s27, %s3087_s1 }
   0xa   :  { %p2455_p2 = pnand %p2453_p1, %p2450_p0 }
   0xc   :  { %2458 = shalt.err (!%p2455_p2)
}
   0xd   :  { %s2459_s14 = scalar_lea.vmem %s42_s22, 256  ;;  %p2464_p4 = scmp.lt.s32.totalorder %s42_s22, %s42_s22 }
   0xe   :  { %p2460_p3 = scmp.ne.s32.totalorder %s42_s22, %s2459_s14  ;;  %p2465_p5 = scmp.lt.s32.totalorder %s2459_s14, %s2459_s14 }
  0x10   :  { %p2466_p6 = por %p2465_p5, %p2464_p4 }
  0x12   :  { %p2467_p7 = pnand %p2466_p6, %p2460_p3 }
  0x14   :  { %2470 = shalt.err (!%p2467_p7)
}
  0x15   :  { %s2661_s15 = smov 128   ;;  %s2662_s16 = smov 8  }
  0x16   :  { %47 = dma.hbm_to_vmem [thread:$0]  %s3087_s1, 256, %s42_s22, [#allocation6], %s2661_s15, %s2661_s15, %s2662_s16  }
  0x17   :  { %s2471_s21 = scalar_lea.hbm %s3089_s3, 512 }
  0x18   :  { %p2472_p8 = scmp.ne.s32.totalorder %s3089_s3, %s2471_s21  ;;  %p2475_p9 = scmp.lt.u32.totalorder %s2471_s21, %s3089_s3 }
  0x1a   :  { %p2477_p10 = pnand %p2475_p9, %p2472_p8 }
  0x1c   :  { %2480 = shalt.err (!%p2477_p10)
}
  0x1d   :  { %s2481_s28 = scalar_lea.vmem %s2740_s24, 512  ;;  %p2486_p12 = scmp.lt.s32.totalorder %s2740_s24, %s2740_s24 }
  0x1e   :  { %p2482_p11 = scmp.ne.s32.totalorder %s2740_s24, %s2481_s28  ;;  %p2487_p13 = scmp.lt.s32.totalorder %s2481_s28, %s2481_s28 }
  0x20   :  { %p2488_p0 = por %p2487_p13, %p2486_p12 }
  0x22   :  { %p2489_p1 = pnand %p2488_p0, %p2482_p11 }
  0x24   :  { %2492 = shalt.err (!%p2489_p1)
}
  0x25   :  { %71 = dma.hbm_to_vmem [thread:$0]  %s3089_s3, 512, %s2740_s24, [#allocation9], %s2661_s15, %s2661_s15, %s2662_s16  }
  0x26   :  { %s2663_s29 = smov [#allocation11]   ;;  %s2664_s13 = smov [#allocation2]  }
  0x27   :  { %s89_s30 = sshll.u32 %s2663_s29, 4  ;;  %s29_s14 = sshll.u32 %s2664_s13, 4  ;;  %s90_s30 = int_to_ptr.vmem [resolvable:$true] %s89_s30  ;;  %s2777_s14 = int_to_ptr.vmem [resolvable:$true] %s29_s14 }
  0x28   :  { %s2493_s19 = scalar_lea.hbm %s3091_s5, 512 }
  0x29   :  { %p2494_p2 = scmp.ne.s32.totalorder %s3091_s5, %s2493_s19  ;;  %p2497_p3 = scmp.lt.u32.totalorder %s2493_s19, %s3091_s5 }
  0x2b   :  { %p2499_p4 = pnand %p2497_p3, %p2494_p2 }
  0x2d   :  { %2502 = shalt.err (!%p2499_p4)
}
  0x2e   :  { %s2503_s3 = scalar_lea.vmem %s90_s30, 512  ;;  %p2508_p6 = scmp.lt.s32.totalorder %s90_s30, %s90_s30 }
  0x2f   :  { %p2504_p5 = scmp.ne.s32.totalorder %s90_s30, %s2503_s3  ;;  %p2509_p7 = scmp.lt.s32.totalorder %s2503_s3, %s2503_s3 }
  0x31   :  { %p2510_p8 = por %p2509_p7, %p2508_p6 }
  0x33   :  { %p2511_p9 = pnand %p2510_p8, %p2504_p5 }
  0x35   :  { %2514 = shalt.err (!%p2511_p9)
}
  0x36   :  { %95 = dma.hbm_to_vmem [thread:$0]  %s3091_s5, 512, %s90_s30, [#allocation12], %s2661_s15, %s2661_s15, %s2662_s16  }
  0x37   :  { %s2515_s1 = scalar_lea.hbm %s3086_s0, 256 }
  0x38   :  { %p2516_p10 = scmp.ne.s32.totalorder %s3086_s0, %s2515_s1  ;;  %p2519_p11 = scmp.lt.u32.totalorder %s2515_s1, %s3086_s0 }
  0x3a   :  { %p2521_p12 = pnand %p2519_p11, %p2516_p10 }
  0x3c   :  { %2524 = shalt.err (!%p2521_p12)
}
  0x3d   :  { %s2525_s18 = scalar_lea.vmem %s2777_s14, 256  ;;  %p2530_p0 = scmp.lt.s32.totalorder %s2777_s14, %s2777_s14 }
  0x3e   :  { %p2526_p13 = scmp.ne.s32.totalorder %s2777_s14, %s2525_s18  ;;  %p2531_p1 = scmp.lt.s32.totalorder %s2525_s18, %s2525_s18 }
  0x40   :  { %p2532_p2 = por %p2531_p1, %p2530_p0 }
  0x42   :  { %p2533_p3 = pnand %p2532_p2, %p2526_p13 }
  0x44   :  { %2536 = shalt.err (!%p2533_p3)
}
  0x45   :  { %35 = dma.hbm_to_vmem [thread:$0]  %s3086_s0, 256, %s2777_s14, [#allocation3], %s2661_s15, %s2661_s15, %s2662_s16  }
  0x46   :  { %s2665_s19 = smov [#allocation7]   ;;  %s2666_s21 = smov [#allocation10]  }
  0x47   :  { %s53_s20 = sshll.u32 %s2665_s19, 4  ;;  %s77_s23 = sshll.u32 %s2666_s21, 4  ;;  %s54_s20 = int_to_ptr.vmem [resolvable:$true] %s53_s20  ;;  %s2814_s23 = int_to_ptr.vmem [resolvable:$true] %s77_s23 }
  0x48   :  { %s2537_s24 = scalar_lea.hbm %s3088_s2, 256 }
  0x49   :  { %p2538_p4 = scmp.ne.s32.totalorder %s3088_s2, %s2537_s24  ;;  %p2541_p5 = scmp.lt.u32.totalorder %s2537_s24, %s3088_s2 }
  0x4b   :  { %p2543_p6 = pnand %p2541_p5, %p2538_p4 }
  0x4d   :  { %2546 = shalt.err (!%p2543_p6)
}
  0x4e   :  { %s2547_s0 = scalar_lea.vmem %s54_s20, 256  ;;  %p2552_p8 = scmp.lt.s32.totalorder %s54_s20, %s54_s20 }
  0x4f   :  { %p2548_p7 = scmp.ne.s32.totalorder %s54_s20, %s2547_s0  ;;  %p2553_p9 = scmp.lt.s32.totalorder %s2547_s0, %s2547_s0 }
  0x51   :  { %p2554_p10 = por %p2553_p9, %p2552_p8 }
  0x53   :  { %p2555_p11 = pnand %p2554_p10, %p2548_p7 }
  0x55   :  { %2558 = shalt.err (!%p2555_p11)
}
  0x56   :  { %59 = dma.hbm_to_vmem [thread:$0]  %s3088_s2, 256, %s54_s20, [#allocation6], %s2661_s15, %s2661_s15, %s2662_s16  }
  0x57   :  { %s2559_s17 = scalar_lea.hbm %s3090_s4, 512 }
  0x58   :  { %p2560_p12 = scmp.ne.s32.totalorder %s3090_s4, %s2559_s17  ;;  %p2563_p13 = scmp.lt.u32.totalorder %s2559_s17, %s3090_s4 }
  0x5a   :  { %p2565_p0 = pnand %p2563_p13, %p2560_p12 }
  0x5c   :  { %2568 = shalt.err (!%p2565_p0)
}
  0x5d   :  { %s2569_s21 = scalar_lea.vmem %s2814_s23, 512  ;;  %p2574_p2 = scmp.lt.s32.totalorder %s2814_s23, %s2814_s23 }
  0x5e   :  { %p2570_p1 = scmp.ne.s32.totalorder %s2814_s23, %s2569_s21  ;;  %p2575_p3 = scmp.lt.s32.totalorder %s2569_s21, %s2569_s21 }
  0x60   :  { %p2576_p4 = por %p2575_p3, %p2574_p2 }
  0x62   :  { %p2577_p5 = pnand %p2576_p4, %p2570_p1 }
  0x64   :  { %2580 = shalt.err (!%p2577_p5)
}
  0x65   :  { %83 = dma.hbm_to_vmem [thread:$0]  %s3090_s4, 512, %s2814_s23, [#allocation9], %s2661_s15, %s2661_s15, %s2662_s16  }
  0x66   :  { %s2667_s25 = smov [#allocation13]   ;;  %s2581_s27 = scalar_lea.hbm %s3094_s8, 16 }
  0x67   :  { %s106_s3 = sshll.u32 %s2667_s25, 4  ;;  %p2582_p6 = scmp.ne.s32.totalorder %s3094_s8, %s2581_s27  ;;  %s107_s3 = int_to_ptr.vmem [resolvable:$true] %s106_s3 }
  0x68   :  { %p2585_p7 = scmp.lt.u32.totalorder %s2581_s27, %s3094_s8 }
  0x6a   :  { %p2587_p8 = pnand %p2585_p7, %p2582_p6 }
  0x6c   :  { %2590 = shalt.err (!%p2587_p8)
}
  0x6d   :  { %s2591_s22 = scalar_lea.vmem %s107_s3, 16  ;;  %s2595_s4 = scalar_lea.vmem %s107_s3, 32 }
  0x6e   :  { %p2592_p9 = scmp.ne.s32.totalorder %s107_s3, %s2591_s22  ;;  %p2596_p10 = scmp.lt.s32.totalorder %s107_s3, %s107_s3 }
  0x6f   :  { %p2597_p11 = scmp.lt.s32.totalorder %s2595_s4, %s2591_s22 }
  0x71   :  { %p2598_p12 = por %p2597_p11, %p2596_p10 }
  0x73   :  { %p2599_p13 = pnand %p2598_p12, %p2592_p9 }
  0x75   :  { %2602 = shalt.err (!%p2599_p13)
}
  0x76   :  { %109 = dma.hbm_to_vmem [thread:$0]  %s3094_s8, 16, %s107_s3, [#allocation12]  }
  0x77   :  { %2647 = dma.done.wait [#allocation3], 256  }
  0x78   :  { %2648 = vsyncadd [#allocation3], 4294967040 }
  0x79   :  { %2649 = dma.done.wait [#allocation6], 512  }
  0x7a   :  { %2650 = vsyncadd [#allocation6], 4294966784 }
  0x7b   :  { %2651 = dma.done.wait [#allocation9], 1024  }
  0x7c   :  { %2652 = vsyncadd [#allocation9], 4294966272 }
  0x7d   :  { %2653 = dma.done.wait [#allocation12], 528  }
  0x7e   :  { %2654 = vsyncadd [#allocation12], 4294966768  ;;  %vm152_vm0 = vcmask 261120   ;;  %v141_v0 = vld [vmem:[#allocation8] sm:$0xff]  ;;  %v142_v1 = vld [vmem:[#allocation8 + $0x8] sm:$0xff]  ;;  %v2668_v16 = vmov 0.0  }
  0x7f   :  { %v143_v2 = vld [vmem:[#allocation8 + $0x10] sm:$0xff]  ;;  %v2369_v3 = vpack.c.bf16 %v142_v1, %v141_v0  ;;  %v144_v4 = vld [vmem:[#allocation8 + $0x18] sm:$0xff]  ;;  %v234_v7 = vld [vmem:[#allocation10] sm:$0xff]  ;;  %vm2669_vm1 = vmmov 0   ;;  %s2670_s17 = smov 120   ;;  %vm468_vm2 = vcmask 64512  }
  0x80   :  { %v135_v5 = vld [vmem:[#allocation2] sm:$0xff]  ;;  %v2373_v6 = vpack.c.bf16 %v144_v4, %v143_v2  ;;  %v235_v8 = vld [vmem:[#allocation10 + $0x8] sm:$0xff]  ;;  %v237_v11 = vld [vmem:[#allocation10 + $0x18] sm:$0xff] }
  0x81   :  { %2244 = vmatprep.mubr.msk.f32.mxu1 %vm152_vm0, %v135_v5  ;;  %2370 = vmatprep.subr.bf16.mxu1 %v2369_v3  ;;  %v2377_v9 = vpack.c.bf16 %v235_v8, %v234_v7  ;;  %v236_v10 = vld [vmem:[#allocation10 + $0x10] sm:$0xff]  ;;  %v136_v12 = vld [vmem:[#allocation2 + $0x8] sm:$0xff]  ;;  %v137_v14 = vld [vmem:[#allocation5] sm:$0xff] }
  0x82   :  { %2372 = vmatpush3.bf16.msra.mxu1 %v2369_v3  ;;  %v2381_v13 = vpack.c.bf16 %v237_v11, %v236_v10  ;;  %v138_v15 = vld [vmem:[#allocation5 + $0x8] sm:$0xff]  ;;  %v326_v17 = vld [vmem:[#allocation11] sm:$0xff]  ;;  %v328_v19 = vld [vmem:[#allocation11 + $0x10] sm:$0xff] }
  0x83   :  { %2374 = vmatprep.subr.bf16.mxu1 %v2373_v6  ;;  %v327_v18 = vld [vmem:[#allocation11 + $0x8] sm:$0xff]  ;;  %v329_v21 = vld [vmem:[#allocation11 + $0x18] sm:$0xff]  ;;  %v139_v23 = vld [vmem:[#allocation7] sm:$0xff] }
  0x84   :  { %v2385_v20 = vpack.c.bf16 %v327_v18, %v326_v17  ;;  %v2389_v22 = vpack.c.bf16 %v329_v21, %v328_v19  ;;  %2266 = vmatprep.mubr.msk.f32.mxu0 %vm152_vm0, %v139_v23  ;;  %v140_v24 = vld [vmem:[#allocation7 + $0x8] sm:$0xff]  ;;  %v2132_v25 = vld [vmem:[%s3092_s6] ss:$0 sm:$0xff]  ;;  %s2671_s6 = smov 112   ;;  %v2138_v49 = vld [vmem:[#allocation13] ss:$0 sm:$0xff] }
  0x85   :  { %v2135_v31 = vld [vmem:[%s3093_s7] ss:$0 sm:$0xff]  ;;  %s2672_s7 = smov 104  }
  0x86   :  { %2376 = vmatpush3.bf16.msra.mxu1 %v2373_v6  ;;  %2386 = vmatprep.subr.bf16.mxu0 %v2385_v20 }
  0x87   :  { %2378 = vmatprep.subr.bf16.mxu1 %v2377_v9  ;;  %2388 = vmatpush3.bf16.msra.mxu0 %v2385_v20 }
  0x88   :  { %2390 = vmatprep.subr.bf16.mxu0 %v2389_v22 }
  0x89   :  { %2245 = vmatmul.mubr.msk.f32.vlgmr.msra.gmra.mrb[0].mxu1 %vm152_vm0, %v136_v12 }
  0x8a   :  { %2380 = vmatpush3.bf16.msra.mxu1 %v2377_v9  ;;  %2255 = vmatprep.mubr.msk.f32.mxu1 %vm152_vm0, %v137_v14 }
  0x8b   :  { %2382 = vmatprep.subr.bf16.mxu1 %v2381_v13  ;;  %2392 = vmatpush3.bf16.msra.mxu0 %v2389_v22 }
  0x8c   :  { %2279 = vmatprep.subr.mxu0 %v2668_v16 }
  0x8e   :  { %2384 = vmatpush3.bf16.msra.mxu1 %v2381_v13  ;;  %2267 = vmatmul.mubr.msk.f32.vlgmr.msra.gmra.mrb[0].mxu0 %vm152_vm0, %v140_v24 }
  0x8f   :  { %2269 = vmatprep.subr.mxu1 %v2668_v16  ;;  %2281 = vmatprep.mubr.msk.f32.mxu0 %vm2669_vm1, %v2668_v16 }
  0x91   :  { %2256 = vmatmul.mubr.msk.f32.vlgmr.msra.gmra.mrb[2].mxu1 %vm152_vm0, %v138_v15 }
  0x92   :  { %2271 = vmatprep.mubr.msk.f32.mxu1 %vm2669_vm1, %v2668_v16 }
 0x15c   :  { %v2246_v26 = vpop.f32.mrb[0].mxu1 }
 0x15d   :  { %v225_v27 = vpop.f32.mrb[1].mxu1  ;;  %v231_v29 = vadd.f32 %v2246_v26, %v2132_v25 }
 0x15e   :  { %v226_v28 = vadd.f32 %v2132_v25, %v225_v27 }
 0x15f   :  { %v419_v32 = vmul.f32 0.35355338, %v231_v29 }
 0x160   :  { %v418_v30 = vmul.f32 0.35355338, %v226_v28 }
 0x161   :  { %v2268_v50 = vpop.f32.mrb[0].mxu0 }
 0x162   :  { %422 = vrot.lane.b32.xlu1 %v418_v30, %s2670_s17  ;;  %v2933_v51 = vadd.f32 %v2268_v50, %v2138_v49  ;;  %v409_v52 = vpop.f32.mrb[1].mxu0 }
 0x163   :  { %v2935_v53 = vadd.f32 %v2138_v49, %v409_v52 }
 0x164   :  { %v2257_v33 = vpop.f32.mrb[2].mxu1 }
 0x165   :  { %v317_v34 = vpop.f32.mrb[3].mxu1  ;;  %v323_v36 = vadd.f32 %v2257_v33, %v2135_v31 }
 0x166   :  { %v318_v35 = vadd.f32 %v2135_v31, %v317_v34  ;;  %424 = vrot.lane.b32.xlu1 %v419_v32, %s2670_s17 }
 0x168   :  { %436 = vrot.lane.b32.xlu0 %v318_v35, %s2670_s17  ;;  %2270 = vmatpush3.xpose.msk.msra.mxu1 %vm468_vm2, %v318_v35 }
 0x169   :  { %2274 = vmatprep.subr.mxu1 %v2668_v16 }
 0x16a   :  { %442 = vrot.lane.b32.xlu1 %v323_v36, %s2671_s6 }
 0x16b   :  { %2272 = vmatmul.mubr.msk.f32.vlgmr.msra.gmra.mrb[4].mxu1 %vm468_vm2, %v418_v30 }
 0x16c   :  { %438 = vrot.lane.b32.xlu0 %v323_v36, %s2670_s17  ;;  %2275 = vmatpush3.xpose.msk.msra.mxu1 %vm468_vm2, %v323_v36 }
 0x16d   :  { %2276 = vmatprep.mubr.msk.f32.mxu1 %vm2669_vm1, %v2668_v16  ;;  %2284 = vmatprep.subr.mxu1 %v2668_v16 }
 0x16e   :  { %428 = vrot.lane.b32.xlu1 %v419_v32, %s2671_s6 }
 0x16f   :  { %2277 = vmatmul.mubr.msk.f32.vlgmr.msra.gmra.mrb[6].mxu1 %vm468_vm2, %v419_v32 }
 0x170   :  { %440 = vrot.lane.b32.xlu0 %v318_v35, %s2671_s6  ;;  %2286 = vmatprep.mubr.msk.f32.mxu1 %vm2669_vm1, %v2668_v16 }
 0x172   :  { %446 = vrot.lane.b32.xlu1 %v323_v36, %s2672_s7 }
 0x174   :  { %426 = vrot.lane.b32.xlu0 %v418_v30, %s2671_s6 }
 0x176   :  { %432 = vrot.lane.b32.xlu1 %v419_v32, %s2672_s7 }
 0x178   :  { %444 = vrot.lane.b32.xlu0 %v318_v35, %s2672_s7 }
 0x17c   :  { %430 = vrot.lane.b32.xlu0 %v418_v30, %s2672_s7 }
 0x1d4   :  { %v423_v37 = vpop.permute.xlu1 %422 }
 0x1d8   :  { %v425_v38 = vpop.permute.xlu1 %424 }
 0x1da   :  { %v437_v39 = vpop.permute.xlu0 %436 }
 0x1db   :  { %2280 = vmatpush3.xpose.msk.msra.mxu0 %vm468_vm2, %v437_v39 }
 0x1dc   :  { %v443_v40 = vpop.permute.xlu1 %442  ;;  %2289 = vmatprep.subr.mxu0 %v2668_v16 }
 0x1de   :  { %v439_v41 = vpop.permute.xlu0 %438  ;;  %2282 = vmatmul.mubr.msk.f32.vlgmr.msra.gmra.mrb[2].mxu0 %vm468_vm2, %v423_v37 }
 0x1df   :  { %2285 = vmatpush3.xpose.msk.msra.mxu1 %vm468_vm2, %v439_v41  ;;  %2291 = vmatprep.mubr.msk.f32.mxu0 %vm2669_vm1, %v2668_v16 }
 0x1e0   :  { %v429_v42 = vpop.permute.xlu1 %428  ;;  %2294 = vmatprep.subr.mxu1 %v2668_v16 }
 0x1e2   :  { %v441_v43 = vpop.permute.xlu0 %440  ;;  %2287 = vmatmul.mubr.msk.f32.vlgmr.msra.gmra.mrb[8].mxu1 %vm468_vm2, %v425_v38 }
 0x1e3   :  { %2290 = vmatpush3.xpose.msk.msra.mxu0 %vm468_vm2, %v441_v43  ;;  %2295 = vmatpush3.xpose.msk.msra.mxu1 %vm468_vm2, %v443_v40 }
 0x1e4   :  { %v447_v44 = vpop.permute.xlu1 %446  ;;  %2296 = vmatprep.mubr.msk.f32.mxu1 %vm2669_vm1, %v2668_v16  ;;  %2304 = vmatprep.subr.mxu1 %v2668_v16 }
 0x1e5   :  { %2299 = vmatprep.subr.mxu0 %v2668_v16 }
 0x1e6   :  { %v427_v45 = vpop.permute.xlu0 %426  ;;  %2297 = vmatmul.mubr.msk.f32.vlgmr.msra.gmra.mrb[10].mxu1 %vm468_vm2, %v429_v42 }
 0x1e7   :  { %2292 = vmatmul.mubr.msk.f32.vlgmr.msra.gmra.mrb[4].mxu0 %vm468_vm2, %v427_v45  ;;  %2305 = vmatpush3.xpose.msk.msra.mxu1 %vm468_vm2, %v447_v44 }
 0x1e8   :  { %v433_v46 = vpop.permute.xlu1 %432  ;;  %2306 = vmatprep.mubr.msk.f32.mxu1 %vm2669_vm1, %v2668_v16  ;;  %2301 = vmatprep.mubr.msk.f32.mxu0 %vm2669_vm1, %v2668_v16 }
 0x1e9   :  { %2314 = vmatprep.subr.mxu1 %v2668_v16 }
 0x1ea   :  { %v445_v47 = vpop.permute.xlu0 %444  ;;  %2307 = vmatmul.mubr.msk.f32.vlgmr.msra.gmra.mrb[12].mxu1 %vm468_vm2, %v433_v46 }
 0x1eb   :  { %2300 = vmatpush3.xpose.msk.msra.mxu0 %vm468_vm2, %v445_v47  ;;  %2316 = vmatprep.mubr.msk.f32.mxu1 %vm2669_vm1, %v2668_v16 }
 0x1ec   :  { %2309 = vmatprep.subr.mxu0 %v2668_v16  ;;  %2315 = vmatpush3.msra.mxu1 %v2933_v51 }
 0x1ed   :  { %2324 = vmatprep.subr.mxu1 %v2668_v16 }
 0x1ee   :  { %v431_v48 = vpop.permute.xlu0 %430 }
 0x1ef   :  { %2302 = vmatmul.mubr.msk.f32.vlgmr.msra.gmra.mrb[6].mxu0 %vm468_vm2, %v431_v48 }
 0x1f0   :  { %2311 = vmatprep.mubr.msk.f32.mxu0 %vm2669_vm1, %v2668_v16  ;;  %2310 = vmatpush3.msra.mxu0 %v2935_v53 }
 0x1f1   :  { %2319 = vmatprep.subr.mxu0 %v2668_v16 }
 0x23e   :  { %v539_v54 = vpop.f32.mrb[4].mxu1 }
 0x23f   :  { %v2273_v55 = vpop.f32.mrb[5].mxu1  ;;  %v1061_v56 = vsel %vm468_vm2, %v539_v54, -inf }
 0x240   :  { %1062 = vmax.xlane.f32.xlu0 %v1061_v56 }
 0x242   :  { %v613_v57 = vpop.f32.mrb[6].mxu1 }
 0x243   :  { %v2278_v58 = vpop.f32.mrb[7].mxu1  ;;  %v1064_v59 = vsel %vm468_vm2, %v613_v57, -inf }
 0x244   :  { %1065 = vmax.xlane.f32.xlu1 %v1064_v59 }
 0x2b1   :  { %v687_v60 = vpop.f32.mrb[2].mxu0 }
 0x2b2   :  { %v2283_v61 = vpop.f32.mrb[3].mxu0  ;;  %v1067_v62 = vsel %vm468_vm2, %v687_v60, -inf }
 0x2b3   :  { %1068 = vmax.xlane.f32.xlu0 %v1067_v62 }
 0x2b5   :  { %v761_v63 = vpop.f32.mrb[8].mxu1 }
 0x2b6   :  { %v2288_v0 = vpop.f32.mrb[9].mxu1  ;;  %v1070_v1 = vsel %vm468_vm2, %v761_v63, -inf }
 0x2b7   :  { %1071 = vmax.xlane.f32.xlu0 %v1070_v1 }
 0x2b9   :  { %v2945_v2 = vpop.f32.mrb[10].mxu1 }
 0x2ba   :  { %v835_v3 = vpop.f32.mrb[4].mxu0  ;;  %v2298_v4 = vpop.f32.mrb[11].mxu1  ;;  %v1076_v5 = vsel %vm468_vm2, %v2945_v2, -inf }
 0x2bb   :  { %v2293_v6 = vpop.f32.mrb[5].mxu0  ;;  %1077 = vmax.xlane.f32.xlu0 %v1076_v5  ;;  %v1073_v7 = vsel %vm468_vm2, %v835_v3, -inf }
 0x2bc   :  { %1074 = vmax.xlane.f32.xlu1 %v1073_v7 }
 0x2bd   :  { %v2950_v8 = vpop.f32.mrb[12].mxu1 }
 0x2be   :  { %v2308_v9 = vpop.f32.mrb[13].mxu1  ;;  %v1082_v10 = vsel %vm468_vm2, %v2950_v8, -inf }
 0x2bf   :  { %1083 = vmax.xlane.f32.xlu0 %v1082_v10 }
 0x2c2   :  { %v983_v11 = vpop.f32.mrb[6].mxu0 }
 0x2c3   :  { %v2303_v12 = vpop.f32.mrb[7].mxu0  ;;  %v1079_v13 = vsel %vm468_vm2, %v983_v11, -inf }
 0x2c4   :  { %1080 = vmax.xlane.f32.xlu1 %v1079_v13 }
 0x2cd   :  { %v1063_v19 = vpop.xlane.xlu0 %1062 }
 0x2ce   :  { %v1085_v21 = vsub.f32 %v539_v54, %v1063_v19 }
 0x2d0   :  { %v1093_v22 = vmul.f32 1.442695, %v1085_v21 }
 0x2d1   :  { %v1066_v14 = vpop.xlane.xlu1 %1065 }
 0x2d2   :  { %v1086_v15 = vsub.f32 %v613_v57, %v1066_v14 }
 0x2d4   :  { %v1095_v17 = vmul.f32 1.442695, %v1086_v15 }
 0x2d5   :  { %450 = vrot.lane.b32.xlu1 %v2935_v53, %s2670_s17 }
 0x2d6   :  { %2417 = vpow2.f32 %v1095_v17 }
 0x2d7   :  { %2419 = vpow2.f32 %v1093_v22 }
 0x2e0   :  { %v2418_v18 = vpop.eup %2417 }
 0x2e1   :  { %v1112_v20 = vsel %vm468_vm2, %v2418_v18, 0.0  ;;  %v2420_v23 = vpop.eup %2419 }
 0x2e2   :  { %1113 = vadd.xlane.f32.xlu0 %v1112_v20  ;;  %v1109_v24 = vsel %vm468_vm2, %v2420_v23, 0.0 }
 0x2f9   :  { %1110 = vadd.xlane.f32.xlu1 %v1109_v24  ;;  %v1733_v24 = vld [vmem:[%s3095_s9] sm:$0xff] }
 0x30a   :  { %456 = vrot.lane.b32.xlu1 %v2935_v53, %s2671_s6 }
 0x30e   :  { %458 = vrot.lane.b32.xlu1 %v2933_v51, %s2671_s6 }
 0x340   :  { %v1069_v25 = vpop.xlane.xlu0 %1068 }
 0x341   :  { %v1087_v26 = vsub.f32 %v687_v60, %v1069_v25 }
 0x343   :  { %v1097_v27 = vmul.f32 1.442695, %v1087_v26 }
 0x344   :  { %v1072_v28 = vpop.xlane.xlu0 %1071 }
 0x345   :  { %2421 = vpow2.f32 %v1097_v27  ;;  %v1088_v29 = vsub.f32 %v761_v63, %v1072_v28 }
 0x347   :  { %v1099_v30 = vmul.f32 1.442695, %v1088_v29 }
 0x348   :  { %v1078_v45 = vpop.xlane.xlu0 %1077 }
 0x349   :  { %2423 = vpow2.f32 %v1099_v30  ;;  %v1075_v31 = vpop.xlane.xlu1 %1074  ;;  %v1090_v48 = vsub.f32 %v2945_v2, %v1078_v45 }
 0x34a   :  { %v1089_v32 = vsub.f32 %v835_v3, %v1075_v31 }
 0x34b   :  { %v1103_v49 = vmul.f32 1.442695, %v1090_v48 }
 0x34c   :  { %v1101_v33 = vmul.f32 1.442695, %v1089_v32  ;;  %v1084_v46 = vpop.xlane.xlu0 %1083 }
 0x34d   :  { %v1092_v50 = vsub.f32 %v2950_v8, %v1084_v46 }
 0x34e   :  { %2425 = vpow2.f32 %v1101_v33 }
 0x34f   :  { %v2422_v34 = vpop.eup %2421  ;;  %v1107_v55 = vmul.f32 1.442695, %v1092_v50 }
 0x350   :  { %v1115_v35 = vsel %vm468_vm2, %v2422_v34, 0.0 }
 0x351   :  { %1116 = vadd.xlane.f32.xlu1 %v1115_v35  ;;  %v1081_v36 = vpop.xlane.xlu1 %1080 }
 0x352   :  { %v1091_v37 = vsub.f32 %v983_v11, %v1081_v36 }
 0x353   :  { %v2424_v38 = vpop.eup %2423 }
 0x354   :  { %v1105_v39 = vmul.f32 1.442695, %v1091_v37  ;;  %v1118_v40 = vsel %vm468_vm2, %v2424_v38, 0.0 }
 0x355   :  { %1119 = vadd.xlane.f32.xlu0 %v1118_v40  ;;  %v451_v56 = vpop.permute.xlu1 %450 }
 0x356   :  { %2427 = vpow2.f32 %v1105_v39  ;;  %v1734_v39 = vld [vmem:[%s3095_s9 + $0x8] sm:$0xff] }
 0x358   :  { %v2965_v41 = vpop.eup %2425 }
 0x359   :  { %v1121_v42 = vsel %vm468_vm2, %v2965_v41, 0.0 }
 0x35a   :  { %1122 = vadd.xlane.f32.xlu1 %v1121_v42 }
 0x360   :  { %v2969_v43 = vpop.eup %2427 }
 0x361   :  { %v1127_v44 = vsel %vm468_vm2, %v2969_v43, 0.0 }
 0x362   :  { %1128 = vadd.xlane.f32.xlu1 %v1127_v44 }
 0x36b   :  { %452 = vrot.lane.b32.xlu0 %v2933_v51, %s2670_s17 }
 0x36f   :  { %v1114_v47 = vpop.xlane.xlu0 %1113 }
 0x370   :  { %2429 = vrcp.f32 %v1114_v47  ;;  %v1736_v47 = vld [vmem:[%s3095_s9 + $0x18] sm:$0xff] }
 0x371   :  { %2431 = vpow2.f32 %v1103_v49 }
 0x372   :  { %2433 = vpow2.f32 %v1107_v55 }
 0x373   :  { %464 = vrot.lane.b32.xlu1 %v2933_v51, %s2672_s7 }
 0x37a   :  { %v2430_v52 = vpop.eup %2429 }
 0x37b   :  { %v2979_v54 = vmul.f32 %v2430_v52, %v2418_v18  ;;  %v2985_v57 = vpop.eup %2431 }
 0x37c   :  { %v1124_v58 = vsel %vm468_vm2, %v2985_v57, 0.0  ;;  %v2989_v59 = vpop.eup %2433 }
 0x37d   :  { %2317 = vmatmul.mubr.msk.f32.vlgmr.msra.gmra.mrb[14].mxu1 %vm468_vm2, %v2979_v54  ;;  %v1130_v60 = vsel %vm468_vm2, %v2989_v59, 0.0  ;;  %v2085_v30 = vsel %vm468_vm2, %v2979_v54, 0.0 }
 0x37e   :  { %2326 = vmatprep.mubr.msk.f32.mxu1 %vm2669_vm1, %v2668_v16 }
 0x386   :  { %v1111_v51 = vpop.xlane.xlu1 %1110 }
 0x387   :  { %2435 = vrcp.f32 %v1111_v51 }
 0x38a   :  { %1125 = vadd.xlane.f32.xlu0 %v1124_v58  ;;  %v457_v63 = vpop.permute.xlu1 %456 }
 0x38e   :  { %1131 = vadd.xlane.f32.xlu0 %v1130_v60  ;;  %v459_v0 = vpop.permute.xlu1 %458 }
 0x391   :  { %v2436_v61 = vpop.eup %2435 }
 0x392   :  { %v1141_v62 = vmul.f32 %v2436_v61, %v2420_v23 }
 0x394   :  { %2312 = vmatmul.mubr.msk.f32.vlgmr.msra.gmra.mrb[8].mxu0 %vm468_vm2, %v1141_v62  ;;  %v2078_v12 = vsel %vm468_vm2, %v1141_v62, 0.0 }
 0x395   :  { %2320 = vmatpush3.msra.mxu0 %v451_v56  ;;  %2321 = vmatprep.mubr.msk.f32.mxu0 %vm2669_vm1, %v2668_v16 }
 0x396   :  { %2329 = vmatprep.subr.mxu0 %v2668_v16 }
 0x3a4   :  { %462 = vrot.lane.b32.xlu0 %v2935_v53, %s2672_s7 }
 0x3de   :  { %v1117_v1 = vpop.xlane.xlu1 %1116 }
 0x3df   :  { %2437 = vrcp.f32 %v1117_v1 }
 0x3e2   :  { %v1120_v2 = vpop.xlane.xlu0 %1119 }
 0x3e3   :  { %2439 = vrcp.f32 %v1120_v2 }
 0x3e6   :  { %v453_v3 = vpop.permute.xlu0 %452 }
 0x3e7   :  { %v1123_v4 = vpop.xlane.xlu1 %1122  ;;  %2325 = vmatpush3.msra.mxu1 %v453_v3 }
 0x3e8   :  { %2441 = vrcp.f32 %v1123_v4  ;;  %2334 = vmatprep.subr.mxu1 %v2668_v16 }
 0x3e9   :  { %v2438_v5 = vpop.eup %2437 }
 0x3ea   :  { %v1143_v6 = vmul.f32 %v2438_v5, %v2422_v34 }
 0x3ec   :  { %2322 = vmatmul.mubr.msk.f32.vlgmr.msra.gmra.mrb[10].mxu0 %vm468_vm2, %v1143_v6  ;;  %v2079_v11 = vsel %vm468_vm2, %v1143_v6, 0.0 }
 0x3ed   :  { %v2440_v7 = vpop.eup %2439  ;;  %2330 = vmatpush3.msra.mxu0 %v457_v63  ;;  %2331 = vmatprep.mubr.msk.f32.mxu0 %vm2669_vm1, %v2668_v16  ;;  %v2080_v15 = vadd.f32 %v2079_v11, %v2078_v12 }
 0x3ee   :  { %v1144_v53 = vmul.f32 %v2440_v7, %v2424_v38  ;;  %2339 = vmatprep.subr.mxu0 %v2668_v16 }
 0x3ef   :  { %v1129_v8 = vpop.xlane.xlu1 %1128 }
 0x3f0   :  { %2443 = vrcp.f32 %v1129_v8  ;;  %2327 = vmatmul.mubr.msk.f32.vlgmr.msra.gmra.mrb[16].mxu1 %vm468_vm2, %v1144_v53  ;;  %v2086_v28 = vsel %vm468_vm2, %v1144_v53, 0.0 }
 0x3f1   :  { %2335 = vmatpush3.msra.mxu1 %v459_v0  ;;  %2336 = vmatprep.mubr.msk.f32.mxu1 %vm2669_vm1, %v2668_v16  ;;  %v2087_v33 = vadd.f32 %v2086_v28, %v2085_v30 }
 0x3f2   :  { %v2442_v9 = vpop.eup %2441  ;;  %2344 = vmatprep.subr.mxu1 %v2668_v16 }
 0x3f3   :  { %v1145_v10 = vmul.f32 %v2442_v9, %v2965_v41  ;;  %v465_v29 = vpop.permute.xlu1 %464 }
 0x3f5   :  { %2332 = vmatmul.mubr.msk.f32.vlgmr.msra.gmra.mrb[12].mxu0 %vm468_vm2, %v1145_v10  ;;  %v2081_v13 = vsel %vm468_vm2, %v1145_v10, 0.0 }
 0x3f6   :  { %2341 = vmatprep.mubr.msk.f32.mxu0 %vm2669_vm1, %v2668_v16  ;;  %v2082_v18 = vadd.f32 %v2081_v13, %v2080_v15 }
 0x3fa   :  { %v2444_v14 = vpop.eup %2443 }
 0x3fb   :  { %v1147_v17 = vmul.f32 %v2444_v14, %v2969_v43  ;;  %v1735_v43 = vld [vmem:[%s3095_s9 + $0x10] sm:$0xff]  ;;  %s2673_s9 = smov [#allocation15]  }
 0x3fc   :  { %s2113_s26 = sshll.u32 %s2673_s9, 4  ;;  %s2114_s26 = int_to_ptr.vmem [resolvable:$true] %s2113_s26 }
 0x3fd   :  { %v2083_v19 = vsel %vm468_vm2, %v1147_v17, 0.0  ;;  %s2603_s27 = scalar_lea.vmem %s2114_s26, 256  ;;  %p2608_p1 = scmp.lt.s32.totalorder %s2114_s26, %s2114_s26 }
 0x3fe   :  { %v2084_v20 = vadd.f32 %v2083_v19, %v2082_v18  ;;  %p2604_p0 = scmp.ne.s32.totalorder %s2114_s26, %s2603_s27  ;;  %p2609_p2 = scmp.lt.s32.totalorder %s2603_s27, %s2603_s27 }
 0x400   :  { %v2092_v21 = vmul.f32 0.25, %v2084_v20  ;;  %p2610_p3 = por %p2609_p2, %p2608_p1 }
 0x402   :  { %2094 = vst.msk [vmem:[#allocation15] sm:$0xff] %vm468_vm2, %v2092_v21  ;;  %p2611_p4 = pnand %p2610_p3, %p2604_p0 }
 0x417   :  { %v1126_v22 = vpop.xlane.xlu0 %1125 }
 0x418   :  { %2445 = vrcp.f32 %v1126_v22 }
 0x41b   :  { %v1132_v23 = vpop.xlane.xlu0 %1131 }
 0x41c   :  { %2447 = vrcp.f32 %v1132_v23 }
 0x41f   :  { %v463_v25 = vpop.permute.xlu0 %462 }
 0x420   :  { %2340 = vmatpush3.msra.mxu0 %v463_v25 }
 0x421   :  { %2342 = vmatmul.mubr.msk.f32.vlgmr.msra.gmra.mrb[14].mxu0 %vm468_vm2, %v1147_v17  ;;  %2349 = vmatprep.subr.mxu0 %v1733_v24 }
 0x422   :  { %v2446_v26 = vpop.eup %2445  ;;  %2350 = vmatpush3.msra.mxu0 %v1733_v24 }
 0x423   :  { %v1146_v27 = vmul.f32 %v2446_v26, %v2985_v57  ;;  %2354 = vmatprep.subr.mxu0 %v1734_v39 }
 0x425   :  { %2337 = vmatmul.mubr.msk.f32.vlgmr.msra.gmra.mrb[18].mxu1 %vm468_vm2, %v1146_v27  ;;  %v2088_v31 = vsel %vm468_vm2, %v1146_v27, 0.0 }
 0x426   :  { %v2448_v32 = vpop.eup %2447  ;;  %2345 = vmatpush3.msra.mxu1 %v465_v29  ;;  %2346 = vmatprep.mubr.msk.f32.mxu1 %vm2669_vm1, %v2668_v16  ;;  %v2089_v35 = vadd.f32 %v2088_v31, %v2087_v33 }
 0x427   :  { %v1148_v34 = vmul.f32 %v2448_v32, %v2989_v59 }
 0x429   :  { %2347 = vmatmul.mubr.msk.f32.vlgmr.msra.gmra.mrb[20].mxu1 %vm468_vm2, %v1148_v34  ;;  %v2090_v36 = vsel %vm468_vm2, %v1148_v34, 0.0 }
 0x42a   :  { %v2091_v37 = vadd.f32 %v2090_v36, %v2089_v35 }
 0x42c   :  { %v2093_v38 = vmul.f32 0.25, %v2091_v37 }
 0x42e   :  { %2095 = vst.msk [vmem:[#allocation15 + $0x8] sm:$0xff] %vm468_vm2, %v2093_v38 }
 0x450   :  { %v1291_v40 = vpop.f32.mrb[14].mxu1 }
 0x451   :  { %v2318_v41 = vpop.f32.mrb[15].mxu1 }
 0x467   :  { %v1218_v16 = vpop.f32.mrb[8].mxu0 }
 0x468   :  { %v2313_v42 = vpop.f32.mrb[9].mxu0  ;;  %2351 = vmatprep.mubr.msk.f32.mxu0 %vm468_vm2, %v1218_v16 }
 0x469   :  { %2352 = vmatmul.mubr.msk.f32.vlgmr.msra.gmra.mrb[16].mxu0 %vm468_vm2, %v1291_v40 }
 0x46a   :  { %2355 = vmatpush3.msra.mxu0 %v1734_v39 }
 0x46b   :  { %2359 = vmatprep.subr.mxu0 %v1735_v43 }
 0x4bf   :  { %v1364_v44 = vpop.f32.mrb[10].mxu0 }
 0x4c0   :  { %v2323_v45 = vpop.f32.mrb[11].mxu0  ;;  %2356 = vmatprep.mubr.msk.f32.mxu0 %vm468_vm2, %v1364_v44 }
 0x4c3   :  { %v1437_v46 = vpop.f32.mrb[16].mxu1 }
 0x4c4   :  { %v2328_v48 = vpop.f32.mrb[17].mxu1  ;;  %2357 = vmatmul.mubr.msk.f32.vlgmr.msra.gmra.mrb[16].mxu0 %vm468_vm2, %v1437_v46 }
 0x4c5   :  { %2360 = vmatpush3.msra.mxu0 %v1735_v43 }
 0x4c6   :  { %2364 = vmatprep.subr.mxu0 %v1736_v47 }
 0x4c8   :  { %v1510_v49 = vpop.f32.mrb[12].mxu0 }
 0x4c9   :  { %v2333_v50 = vpop.f32.mrb[13].mxu0  ;;  %2361 = vmatprep.mubr.msk.f32.mxu0 %vm468_vm2, %v1510_v49 }
 0x4f4   :  { %v1656_v52 = vpop.f32.mrb[14].mxu0 }
 0x4f5   :  { %v2343_v54 = vpop.f32.mrb[15].mxu0 }
 0x4f8   :  { %v1583_v55 = vpop.f32.mrb[18].mxu1 }
 0x4f9   :  { %v2338_v56 = vpop.f32.mrb[19].mxu1  ;;  %2362 = vmatmul.mubr.msk.f32.vlgmr.msra.gmra.mrb[16].mxu0 %vm468_vm2, %v1583_v55 }
 0x4fa   :  { %2365 = vmatpush3.msra.mxu0 %v1736_v47  ;;  %2366 = vmatprep.mubr.msk.f32.mxu0 %vm468_vm2, %v1656_v52 }
 0x4fc   :  { %v1729_v57 = vpop.f32.mrb[20].mxu1 }
 0x4fd   :  { %v2348_v51 = vpop.f32.mrb[21].mxu1 }
 0x501   :  { %2367 = vmatmul.mubr.msk.f32.vlgmr.msra.gmra.mrb[16].mxu0 %vm468_vm2, %v1729_v57 }
 0x502   :  { %2614 = shalt.err (!%p2611_p4)
}
 0x503   :  { %s2615_s0 = scalar_lea.hbm %s3098_s12, 256 }
 0x504   :  { %p2616_p5 = scmp.ne.s32.totalorder %s3098_s12, %s2615_s0  ;;  %p2619_p6 = scmp.lt.u32.totalorder %s2615_s0, %s3098_s12 }
 0x506   :  { %p2621_p7 = pnand %p2619_p6, %p2616_p5 }
 0x508   :  { %2624 = shalt.err (!%p2621_p7)
}
 0x509   :  { %2119 = dma.vmem_to_hbm [thread:$0]  %s2114_s26, 256, %s3098_s12, [#allocation16], %s2661_s15, %s2661_s15, %s2662_s16  }
 0x50a   :  { %v2165_v58 = vld [vmem:[%s3096_s10] ss:$0 sm:$0xff]  ;;  %s2674_s18 = smov [#allocation14]  }
 0x50b   :  { %s2101_s5 = sshll.u32 %s2674_s18, 4  ;;  %s2102_s5 = int_to_ptr.vmem [resolvable:$true] %s2101_s5 }
 0x50c   :  { %s2625_s6 = scalar_lea.vmem %s2102_s5, 256  ;;  %p2630_p9 = scmp.lt.s32.totalorder %s2102_s5, %s2102_s5 }
 0x50d   :  { %p2626_p8 = scmp.ne.s32.totalorder %s2102_s5, %s2625_s6  ;;  %p2631_p10 = scmp.lt.s32.totalorder %s2625_s6, %s2625_s6 }
 0x50f   :  { %p2632_p11 = por %p2631_p10, %p2630_p9 }
 0x511   :  { %p2633_p12 = pnand %p2632_p11, %p2626_p8 }
 0x5d4   :  { %v2368_v59 = vpop.f32.mrb[16].mxu0 }
 0x5d5   :  { %v2393_v60 = vadd.f32 %v2368_v59, %v2165_v58  ;;  %v2065_v61 = vpop.f32.mrb[17].mxu0 }
 0x5d6   :  { %v2394_v62 = vadd.f32 %v2165_v58, %v2065_v61 }
 0x5d7   :  { %2077 = vst.msk [vmem:[#allocation14 + $0x8] sm:$0xff] %vm152_vm0, %v2393_v60 }
 0x5d8   :  { %2076 = vst.msk [vmem:[#allocation14] sm:$0xff] %vm152_vm0, %v2394_v62 }
 0x5d9   :  { %2636 = shalt.err (!%p2633_p12)
}
 0x5da   :  { %s2637_s7 = scalar_lea.hbm %s3097_s11, 256 }
 0x5db   :  { %p2638_p13 = scmp.ne.s32.totalorder %s3097_s11, %s2637_s7  ;;  %p2641_p0 = scmp.lt.u32.totalorder %s2637_s7, %s3097_s11 }
 0x5dd   :  { %p2643_p1 = pnand %p2641_p0, %p2638_p13 }
 0x5df   :  { %2646 = shalt.err (!%p2643_p1)
}
 0x5e0   :  { %2107 = dma.vmem_to_hbm [thread:$0]  %s2102_s5, 256, %s3097_s11, [#allocation4], %s2661_s15, %s2661_s15, %s2662_s16  }
 0x5e1   :  { %2655 = dma.done.wait [#allocation4], 256  }
 0x5e2   :  { %2656 = vsyncadd [#allocation4], 4294967040 }
 0x5e3   :  { %2657 = dma.done.wait [#allocation16], 256  }
 0x5e4   :  { %2658 = vsyncadd [#allocation16], 4294967040 }
 0x5e5   :  { %2126 = vsyncpa [#allocation3], 1 }
 0x5e6   :  { %2127 = vsyncpa [#allocation6], 1 }
 0x5e7   :  { %2128 = vsyncpa [#allocation9], 1 }
 0x5e8   :  { %2129 = vsyncpa [#allocation12], 1 }
 0x5e9   :  { %2130 = vsyncpa [#allocation4], 1 }
 0x5ea   :  { %2131 = vsyncpa [#allocation16], 1 }

</bundles_post_ra>
